<compile_context>
chip_gen: v7x
topology: tpu7x:2x2x1
jax: 0.10.0
libtpu: 0.0.40
codegen_flags: <defaults>
</compile_context>

<pallas_src>
import functools
import math

import jax
import jax.numpy as jnp
from jax import lax
from jax.experimental import pallas as pl
from jax.experimental.pallas import tpu as pltpu


def _round_up(x, m):
    return ((x + m - 1) // m) * m


def _vmem_ceiling_bytes():
    """Physical VMEM minus headroom (v5e/v6e: 128->112 MiB, v7x: 64->48 MiB)."""
    try:
        info = pltpu.get_tpu_info()
        phys = int(getattr(info, "vmem_capacity_bytes", 64 << 20))
    except Exception:  # pragma: no cover - conservative fallback
        phys = 64 << 20
    return max(32 << 20, phys - (16 << 20))


# -----------------------------------------------------------------------------
# Kernels
# -----------------------------------------------------------------------------
def _hyst_step_kernel(dt_ref, cat_ref, hy_ref, hz_ref,
                      wp_ref, bp_ref, wh_ref, bh_ref,
                      hy_out_ref, hz_out_ref, hp_out_ref):
    """One cell step over a (bt, H_p) batch tile; cat is pre-concatenated."""
    dt = dt_ref[0, 0]
    cat = cat_ref[...]                                     # (bt, fan_in_t), f32
    hy = hy_ref[...]
    hz = hz_ref[...]

    # |.|^2 == elementwise square for real inputs; square in f32 (v5e-safe),
    # cast only the MXU operands to bf16, accumulate in f32.
    cat_lp = cat.astype(wh_ref.dtype)
    sq_lp = (cat * cat).astype(wp_ref.dtype)

    pre_p = jnp.dot(sq_lp, wp_ref[...],
                    preferred_element_type=jnp.float32) + bp_ref[...]
    pre_h = jnp.dot(cat_lp, wh_ref[...],
                    preferred_element_type=jnp.float32) + bh_ref[...]

    hp_new = jnp.tanh(pre_p)
    hz_new = hz + dt * (jnp.tanh(pre_h) + hp_new)
    hy_new = hy + dt * hz_new

    hy_out_ref[...] = hy_new.astype(hy_out_ref.dtype)
    hz_out_ref[...] = hz_new.astype(hz_out_ref.dtype)
    hp_out_ref[...] = hp_new.astype(hp_out_ref.dtype)


def _hyst_seq_kernel(tt_steps, unroll,
                     dt_ref, x_ref, hy0_ref, hz0_ref,
                     wp_ref, bp_ref, wh_ref, bh_ref,
                     hy_seq_ref, hz_seq_ref, hp_seq_ref,
                     hy_s, hz_s):
    """Time-chunked loop: grid=(batch tiles, time chunks); TT steps per call.

    Weights/biases are resident (constant index_map); hy/hz carried in f32
    VMEM scratch across time chunks; outputs stored per step into a
    (TT, bt, H_p) block (one large writeback DMA per chunk).
    """
    tc = pl.program_id(1)
    dt = dt_ref[0, 0]

    @pl.when(tc == 0)
    def _():
        hy_s[...] = hy0_ref[...]
        hz_s[...] = hz0_ref[...]

    # Hoist resident operands out of the timestep loop.
    wp = wp_ref[...]
    wh = wh_ref[...]
    bp = bp_ref[...]
    bh = bh_ref[...]

    def body(tt, carry):
        hy, hz = carry
        x = x_ref[tt]                                      # (bt, n_inp_p)
        # Lane-aligned (segment-padded) concat; pad columns stay exactly zero
        # through the recurrence because weight/bias pad entries are zero.
        cat = jnp.concatenate([x, hz, hy], axis=-1)        # (bt, fan_in_seg)
        pre_p = jnp.dot((cat * cat).astype(wp.dtype), wp,
                        preferred_element_type=jnp.float32) + bp
        pre_h = jnp.dot(cat.astype(wh.dtype), wh,
                        preferred_element_type=jnp.float32) + bh
        hp_new = jnp.tanh(pre_p)
        hz_new = hz + dt * (jnp.tanh(pre_h) + hp_new)
        hy_new = hy + dt * hz_new
        hy_seq_ref[tt] = hy_new.astype(hy_seq_ref.dtype)
        hz_seq_ref[tt] = hz_new.astype(hz_seq_ref.dtype)
        hp_seq_ref[tt] = hp_new.astype(hp_seq_ref.dtype)
        return hy_new, hz_new

    hy_f, hz_f = lax.fori_loop(0, tt_steps, body, (hy_s[...], hz_s[...]),
                               unroll=unroll)
    hy_s[...] = hy_f
    hz_s[...] = hz_f


# -----------------------------------------------------------------------------
# Module
# -----------------------------------------------------------------------------
class HystRNNCell:
    """JAX/Pallas port of the PyTorch HystRNNCell."""

    def __init__(self, n_inp, n_hid, dt, key, param_dtype=jnp.bfloat16):
        self.n_inp = n_inp
        self.n_hid = n_hid
        self.param_dtype = param_dtype
        # dt is a runtime SMEM scalar (no recompile when dt changes).
        self.dt = float(dt)
        self._dt_arr = jnp.full((1, 1), float(dt), jnp.float32)

        self.fan_in = n_inp + 2 * n_hid
        self.n_inp_p = _round_up(n_inp, 128)
        self.n_hid_p = _round_up(n_hid, 128)
        # Tight packing for the single-step path (pre-concatenated input).
        self.fan_in_t = _round_up(self.fan_in, 128)
        # Segment-padded packing for the in-kernel concat of the sequence path.
        self.fan_in_seg = self.n_inp_p + 2 * self.n_hid_p

        self._vmem_ceil = _vmem_ceiling_bytes()

        bound = 1.0 / math.sqrt(self.fan_in)
        k = jax.random.split(key, 4)
        # PyTorch nn.Linear layout: weight (n_hid, fan_in), bias (n_hid,)
        w_i2h = jax.random.uniform(k[0], (n_hid, self.fan_in), jnp.float32, -bound, bound)
        b_i2h = jax.random.uniform(k[1], (n_hid,), jnp.float32, -bound, bound)
        w_i2p = jax.random.uniform(k[2], (n_hid, self.fan_in), jnp.float32, -bound, bound)
        b_i2p = jax.random.uniform(k[3], (n_hid,), jnp.float32, -bound, bound)

        # f32 originals for the pure-JAX reference.
        self._w_i2h, self._b_i2h = w_i2h, b_i2h
        self._w_i2p, self._b_i2p = w_i2p, b_i2p

        def pack_tight(w):
            # (fan_in_t, n_hid_p), rows match the wrapper concat [x|hz|hy].
            wt = jnp.zeros((self.fan_in_t, self.n_hid_p), jnp.float32)
            wt = wt.at[:self.fan_in, :n_hid].set(w.T)
            return wt.astype(param_dtype)

        def pack_seg(w):
            # (fan_in_seg, n_hid_p), rows match [x|pad][hz|pad][hy|pad].
            wt = jnp.zeros((self.fan_in_seg, self.n_hid_p), jnp.float32)
            wt = wt.at[:n_inp, :n_hid].set(w[:, :n_inp].T)
            off = self.n_inp_p
            wt = wt.at[off:off + n_hid, :n_hid].set(w[:, n_inp:n_inp + n_hid].T)
            off += self.n_hid_p
            wt = wt.at[off:off + n_hid, :n_hid].set(w[:, n_inp + n_hid:].T)
            return wt.astype(param_dtype)

        self.wh_t, self.wp_t = pack_tight(w_i2h), pack_tight(w_i2p)
        self.wh_s, self.wp_s = pack_seg(w_i2h), pack_seg(w_i2p)
        self.bh = jnp.zeros((1, self.n_hid_p), jnp.float32).at[0, :n_hid].set(b_i2h)
        self.bp = jnp.zeros((1, self.n_hid_p), jnp.float32).at[0, :n_hid].set(b_i2p)

    # ---- helpers -------------------------------------------------------------
    def _clamp_vmem(self, need):
        return int(min(max(need, 32 << 20), self._vmem_ceil))

    def _pad_state(self, a, B_p):
        out = jnp.zeros((B_p, self.n_hid_p), jnp.float32)
        return out.at[:a.shape[0], :self.n_hid].set(a)

    def _pick_tt(self, T, bt, out_itemsize):
        """Largest divisor of T (<=32) whose blocks stay under a modest budget."""
        budget = 8 << 20
        for cand in (32, 16, 8, 4, 2):
            if T % cand:
                continue
            blk = cand * bt * (self.n_inp_p * 4 + 3 * self.n_hid_p * out_itemsize)
            if blk <= budget:
                return cand
        return 1

    # ---- single-step cell (matches the PyTorch forward signature) -----------
    def __call__(self, x, hy, hz, hp):
        # hp is overwritten before use in the reference module; unused here.
        del hp
        B = x.shape[0]
        B8 = _round_up(B, 8)
        bt = min(512, B8)                 # big activation-streaming tiles
        B_p = _round_up(B8, bt)
        H_p = self.n_hid_p

        # Tight concat built once in the wrapper (hz/hy are plain inputs here);
        # only total fan_in is lane-padded -> no 3x K inflation for small dims.
        cat = jnp.concatenate([x, hz, hy], axis=1).astype(jnp.float32)
        cat_p = (jnp.zeros((B_p, self.fan_in_t), jnp.float32)
                 .at[:B, :self.fan_in].set(cat))
        hy_p = self._pad_state(hy, B_p)
        hz_p = self._pad_state(hz, B_p)

        dt_spec = pl.BlockSpec(memory_space=pltpu.MemorySpace.SMEM)
        cat_spec = pl.BlockSpec((bt, self.fan_in_t), lambda i: (i, 0))
        st_spec = pl.BlockSpec((bt, H_p), lambda i: (i, 0))
        w_spec = pl.BlockSpec((self.fan_in_t, H_p), lambda i: (0, 0))
        b_spec = pl.BlockSpec((1, H_p), lambda i: (0, 0))

        w_bytes = 2 * self.wp_t.size * self.wp_t.dtype.itemsize + 2 * H_p * 4
        act_bytes = bt * (self.fan_in_t + 2 * H_p + 3 * H_p) * 4
        need = 2 * (w_bytes + act_bytes) + (8 << 20)

        out_shape = tuple(jax.ShapeDtypeStruct((B_p, H_p), jnp.float32)
                          for _ in range(3))

        hy_n, hz_n, hp_n = pl.pallas_call(
            _hyst_step_kernel,
            grid=(B_p // bt,),
            in_specs=[dt_spec, cat_spec, st_spec, st_spec,
                      w_spec, b_spec, w_spec, b_spec],
            out_specs=(st_spec, st_spec, st_spec),
            out_shape=out_shape,
            input_output_aliases={2: 0, 3: 1},   # hy/hz inputs alias outputs
            compiler_params=pltpu.CompilerParams(
                dimension_semantics=("parallel",),
                vmem_limit_bytes=self._clamp_vmem(need),
            ),
        )(self._dt_arr, cat_p, hy_p, hz_p, self.wp_t, self.bp, self.wh_t, self.bh)

        sl = lambda a: a[:B, :self.n_hid]
        return sl(hy_n), sl(hz_n), sl(hp_n)

    # ---- fused multi-step: time-chunked grid, weights resident ---------------
    def run_sequence(self, x_seq, hy, hz, hp, out_dtype=jnp.bfloat16):
        del hp
        T, B = x_seq.shape[0], x_seq.shape[1]
        B8 = _round_up(B, 8)
        bt = min(512, B8)                 # bound VMEM residency, megacore batch
        B_p = _round_up(B8, bt)
        H_p = self.n_hid_p
        out_itemsize = jnp.dtype(out_dtype).itemsize
        TT = self._pick_tt(T, bt, out_itemsize)
        unroll = TT <= 16

        x_p = (jnp.zeros((T, B_p, self.n_inp_p), jnp.float32)
               .at[:, :B, :self.n_inp].set(x_seq))
        hy_p = self._pad_state(hy, B_p)
        hz_p = self._pad_state(hz, B_p)

        dt_spec = pl.BlockSpec(memory_space=pltpu.MemorySpace.SMEM)
        xin_spec = pl.BlockSpec((TT, bt, self.n_inp_p), lambda b, tc: (tc, b, 0))
        st0_spec = pl.BlockSpec((bt, H_p), lambda b, tc: (b, 0))
        w_spec = pl.BlockSpec((self.fan_in_seg, H_p), lambda b, tc: (0, 0))
        b_spec = pl.BlockSpec((1, H_p), lambda b, tc: (0, 0))
        seq_spec = pl.BlockSpec((TT, bt, H_p), lambda b, tc: (tc, b, 0))

        blk = (TT * bt * self.n_inp_p * 4
               + 2 * bt * H_p * 4
               + 2 * self.fan_in_seg * H_p * self.wp_s.dtype.itemsize
               + 2 * H_p * 4
               + 3 * TT * bt * H_p * out_itemsize)
        need = 2 * blk + 2 * bt * H_p * 4 + (8 << 20)

        kernel = functools.partial(_hyst_seq_kernel, TT, unroll)
        out_shape = tuple(jax.ShapeDtypeStruct((T, B_p, H_p), out_dtype)
                          for _ in range(3))

        hy_seq, hz_seq, hp_seq = pl.pallas_call(
            kernel,
            grid=(B_p // bt, T // TT),
            in_specs=[dt_spec, xin_spec, st0_spec, st0_spec,
                      w_spec, b_spec, w_spec, b_spec],
            out_specs=(seq_spec, seq_spec, seq_spec),
            out_shape=out_shape,
            scratch_shapes=[pltpu.VMEM((bt, H_p), jnp.float32),   # hy carry
                            pltpu.VMEM((bt, H_p), jnp.float32)],  # hz carry
            compiler_params=pltpu.CompilerParams(
                dimension_semantics=("parallel", "arbitrary"),
                vmem_limit_bytes=self._clamp_vmem(need),
            ),
        )(self._dt_arr, x_p, hy_p, hz_p, self.wp_s, self.bp, self.wh_s, self.bh)

        sl = lambda a: a[:, :B, :self.n_hid]
        return sl(hy_seq), sl(hz_seq), sl(hp_seq)

    # ---- pure-JAX reference (mirrors the PyTorch forward literally, f32) -----
    def reference(self, x, hy, hz, hp):
        del hp
        cat_p = jnp.concatenate(
            [jnp.abs(x) ** 2, jnp.abs(hz) ** 2, jnp.abs(hy) ** 2], axis=1)
        hp_new = jnp.tanh(cat_p @ self._w_i2p.T + self._b_i2p)
        cat_h = jnp.concatenate([x, hz, hy], axis=1)
        hz_new = hz + self.dt * (jnp.tanh(cat_h @ self._w_i2h.T + self._b_i2h) + hp_new)
        hy_new = hy + self.dt * hz_new
        return hy_new, hz_new, hp_new


# -----------------------------------------------------------------------------
# Demo / correctness check
# -----------------------------------------------------------------------------
if __name__ == "__main__":
    B, n_inp, n_hid, T = 8, 16, 32, 8
    dt = 0.1

    key = jax.random.PRNGKey(0)
    k_param, k_x, k_hy, k_hz, k_hp, k_xs = jax.random.split(key, 6)

    cell = HystRNNCell(n_inp, n_hid, dt, k_param)

    x = jax.random.normal(k_x, (B, n_inp), jnp.float32)
    hy = jax.random.normal(k_hy, (B, n_hid), jnp.float32)
    hz = jax.random.normal(k_hz, (B, n_hid), jnp.float32)
    hp = jax.random.normal(k_hp, (B, n_hid), jnp.float32)

    # bf16 matmul operands (and bf16 sequence outputs) -> looser tolerance.
    tol = dict(atol=5e-2, rtol=5e-2)

    # --- single-step cell ---
    hy_k, hz_k, hp_k = cell(x, hy, hz, hp)
    jax.block_until_ready((hy_k, hz_k, hp_k))
    hy_r, hz_r, hp_r = cell.reference(x, hy, hz, hp)
    assert jnp.allclose(hy_k, hy_r, **tol)
    assert jnp.allclose(hz_k, hz_r, **tol)
    assert jnp.allclose(hp_k, hp_r, **tol)

    # --- fused multi-step sequence (time-chunked grid, weights resident) ---
    x_seq = jax.random.normal(k_xs, (T, B, n_inp), jnp.float32)
    hy_s, hz_s, hp_s = cell.run_sequence(x_seq, hy, hz, hp)
    jax.block_until_ready((hy_s, hz_s, hp_s))

    hy_c, hz_c, hp_c = hy, hz, hp
    ref_hy, ref_hz, ref_hp = [], [], []
    for t in range(T):
        hy_c, hz_c, hp_c = cell.reference(x_seq[t], hy_c, hz_c, hp_c)
        ref_hy.append(hy_c), ref_hz.append(hz_c), ref_hp.append(hp_c)
    ref_hy = jnp.stack(ref_hy)
    ref_hz = jnp.stack(ref_hz)
    ref_hp = jnp.stack(ref_hp)
    assert jnp.allclose(hy_s.astype(jnp.float32), ref_hy, **tol)
    assert jnp.allclose(hz_s.astype(jnp.float32), ref_hz, **tol)
    assert jnp.allclose(hp_s.astype(jnp.float32), ref_hp, **tol)

    print("KERNEL_OK")
</pallas_src>

<mosaic_0001>
module attributes {stable_mosaic.version = 11 : i64} {
  func.func @_hyst_step_kernel(%arg0: i32, %arg1: memref<1x1xf32, #tpu.memory_space<smem>>, %arg2: memref<8x128xf32, #tpu.memory_space<vmem>>, %arg3: memref<8x128xf32, #tpu.memory_space<vmem>>, %arg4: memref<8x128xf32, #tpu.memory_space<vmem>>, %arg5: memref<128x128xbf16, #tpu.memory_space<vmem>>, %arg6: memref<1x128xf32, #tpu.memory_space<vmem>>, %arg7: memref<128x128xbf16, #tpu.memory_space<vmem>>, %arg8: memref<1x128xf32, #tpu.memory_space<vmem>>, %arg9: memref<8x128xf32, #tpu.memory_space<vmem>>, %arg10: memref<8x128xf32, #tpu.memory_space<vmem>>, %arg11: memref<8x128xf32, #tpu.memory_space<vmem>>) attributes {dimension_semantics = [#tpu.dimension_semantics<parallel>], iteration_bounds = array<i64: 1>, scalar_prefetch = 0 : i64, scratch_operands = 0 : i64, tpu.core_type = #tpu.core_type<tc>, window_params = [{transform_indices = @transform_0, window_bounds = array<i64: 1, 1>}, {transform_indices = @transform_1, window_bounds = array<i64: 8, 128>}, {transform_indices = @transform_2, window_bounds = array<i64: 8, 128>}, {transform_indices = @transform_3, window_bounds = array<i64: 8, 128>}, {pipeline_mode = #tpu.pipeline_mode<synchronous>, transform_indices = @transform_4, window_bounds = array<i64: 128, 128>}, {pipeline_mode = #tpu.pipeline_mode<synchronous>, transform_indices = @transform_5, window_bounds = array<i64: 1, 128>}, {pipeline_mode = #tpu.pipeline_mode<synchronous>, transform_indices = @transform_6, window_bounds = array<i64: 128, 128>}, {pipeline_mode = #tpu.pipeline_mode<synchronous>, transform_indices = @transform_7, window_bounds = array<i64: 1, 128>}, {transform_indices = @transform_8, window_bounds = array<i64: 8, 128>}, {transform_indices = @transform_9, window_bounds = array<i64: 8, 128>}, {transform_indices = @transform_10, window_bounds = array<i64: 8, 128>}]} {
    %c0 = arith.constant 0 : index
    %c0_0 = arith.constant 0 : index
    %0 = memref.load %arg1[%c0, %c0_0] : memref<1x1xf32, #tpu.memory_space<smem>>
    %c0_1 = arith.constant 0 : index
    %c0_2 = arith.constant 0 : index
    %1 = vector.load %arg2[%c0_1, %c0_2] : memref<8x128xf32, #tpu.memory_space<vmem>>, vector<8x128xf32>
    %c0_3 = arith.constant 0 : index
    %c0_4 = arith.constant 0 : index
    %2 = vector.load %arg3[%c0_3, %c0_4] : memref<8x128xf32, #tpu.memory_space<vmem>>, vector<8x128xf32>
    %c0_5 = arith.constant 0 : index
    %c0_6 = arith.constant 0 : index
    %3 = vector.load %arg4[%c0_5, %c0_6] : memref<8x128xf32, #tpu.memory_space<vmem>>, vector<8x128xf32>
    %4 = arith.truncf %1 : vector<8x128xf32> to vector<8x128xbf16>
    %5 = arith.mulf %1, %1 : vector<8x128xf32>
    %6 = arith.truncf %5 : vector<8x128xf32> to vector<8x128xbf16>
    %c0_7 = arith.constant 0 : index
    %c0_8 = arith.constant 0 : index
    %7 = vector.load %arg5[%c0_7, %c0_8] : memref<128x128xbf16, #tpu.memory_space<vmem>>, vector<128x128xbf16>
    %cst = arith.constant dense<0.000000e+00> : vector<8x128xf32>
    %8 = tpu.matmul %6, %7, %cst {dimension_numbers = #tpu.dot_dimension_numbers<[1], [0], [0], [1], [0, 0, 1, 1], [], []>} : vector<8x128xbf16>, vector<128x128xbf16>, vector<8x128xf32> -> vector<8x128xf32>
    %c0_9 = arith.constant 0 : index
    %c0_10 = arith.constant 0 : index
    %9 = vector.load %arg6[%c0_9, %c0_10] : memref<1x128xf32, #tpu.memory_space<vmem>>, vector<1x128xf32>
    %10 = vector.broadcast %9 : vector<1x128xf32> to vector<8x128xf32>
    %11 = arith.addf %8, %10 : vector<8x128xf32>
    %c0_11 = arith.constant 0 : index
    %c0_12 = arith.constant 0 : index
    %12 = vector.load %arg7[%c0_11, %c0_12] : memref<128x128xbf16, #tpu.memory_space<vmem>>, vector<128x128xbf16>
    %cst_13 = arith.constant dense<0.000000e+00> : vector<8x128xf32>
    %13 = tpu.matmul %4, %12, %cst_13 {dimension_numbers = #tpu.dot_dimension_numbers<[1], [0], [0], [1], [0, 0, 1, 1], [], []>} : vector<8x128xbf16>, vector<128x128xbf16>, vector<8x128xf32> -> vector<8x128xf32>
    %c0_14 = arith.constant 0 : index
    %c0_15 = arith.constant 0 : index
    %14 = vector.load %arg8[%c0_14, %c0_15] : memref<1x128xf32, #tpu.memory_space<vmem>>, vector<1x128xf32>
    %15 = vector.broadcast %14 : vector<1x128xf32> to vector<8x128xf32>
    %16 = arith.addf %13, %15 : vector<8x128xf32>
    %17 = math.tanh %11 : vector<8x128xf32>
    %18 = math.tanh %16 : vector<8x128xf32>
    %19 = arith.addf %18, %17 : vector<8x128xf32>
    %20 = vector.broadcast %0 : f32 to vector<8x128xf32>
    %21 = arith.mulf %20, %19 : vector<8x128xf32>
    %22 = arith.addf %3, %21 : vector<8x128xf32>
    %23 = vector.broadcast %0 : f32 to vector<8x128xf32>
    %24 = arith.mulf %23, %22 : vector<8x128xf32>
    %25 = arith.addf %2, %24 : vector<8x128xf32>
    %c0_16 = arith.constant 0 : index
    %c0_17 = arith.constant 0 : index
    %26 = vector.load %arg9[%c0_16, %c0_17] : memref<8x128xf32, #tpu.memory_space<vmem>>, vector<8x128xf32>
    tpu.vector_store %arg9[%c0_16, %c0_17], %25 {strides = array<i32>} : memref<8x128xf32, #tpu.memory_space<vmem>>, vector<8x128xf32>,
    %c0_18 = arith.constant 0 : index
    %c0_19 = arith.constant 0 : index
    %27 = vector.load %arg10[%c0_18, %c0_19] : memref<8x128xf32, #tpu.memory_space<vmem>>, vector<8x128xf32>
    tpu.vector_store %arg10[%c0_18, %c0_19], %22 {strides = array<i32>} : memref<8x128xf32, #tpu.memory_space<vmem>>, vector<8x128xf32>,
    %c0_20 = arith.constant 0 : index
    %c0_21 = arith.constant 0 : index
    %28 = vector.load %arg11[%c0_20, %c0_21] : memref<8x128xf32, #tpu.memory_space<vmem>>, vector<8x128xf32>
    tpu.vector_store %arg11[%c0_20, %c0_21], %17 {strides = array<i32>} : memref<8x128xf32, #tpu.memory_space<vmem>>, vector<8x128xf32>,
    return
  }
  func.func @transform_0(%arg0: i32) -> (i32, i32) {
    %c0_i32 = arith.constant 0 : i32
    %c0_i32_0 = arith.constant 0 : i32
    %c0_i32_1 = arith.constant 0 : i32
    return %c0_i32, %c0_i32_0 : i32, i32
  }
  func.func @transform_1(%arg0: i32) -> (i32, i32) {
    %c0_i32 = arith.constant 0 : i32
    %c0_i32_0 = arith.constant 0 : i32
    return %arg0, %c0_i32 : i32, i32
  }
  func.func @transform_2(%arg0: i32) -> (i32, i32) {
    %c0_i32 = arith.constant 0 : i32
    %c0_i32_0 = arith.constant 0 : i32
    return %arg0, %c0_i32 : i32, i32
  }
  func.func @transform_3(%arg0: i32) -> (i32, i32) {
    %c0_i32 = arith.constant 0 : i32
    %c0_i32_0 = arith.constant 0 : i32
    return %arg0, %c0_i32 : i32, i32
  }
  func.func @transform_4(%arg0: i32) -> (i32, i32) {
    %c0_i32 = arith.constant 0 : i32
    %c0_i32_0 = arith.constant 0 : i32
    %c0_i32_1 = arith.constant 0 : i32
    return %c0_i32, %c0_i32_0 : i32, i32
  }
  func.func @transform_5(%arg0: i32) -> (i32, i32) {
    %c0_i32 = arith.constant 0 : i32
    %c0_i32_0 = arith.constant 0 : i32
    %c0_i32_1 = arith.constant 0 : i32
    return %c0_i32, %c0_i32_0 : i32, i32
  }
  func.func @transform_6(%arg0: i32) -> (i32, i32) {
    %c0_i32 = arith.constant 0 : i32
    %c0_i32_0 = arith.constant 0 : i32
    %c0_i32_1 = arith.constant 0 : i32
    return %c0_i32, %c0_i32_0 : i32, i32
  }
  func.func @transform_7(%arg0: i32) -> (i32, i32) {
    %c0_i32 = arith.constant 0 : i32
    %c0_i32_0 = arith.constant 0 : i32
    %c0_i32_1 = arith.constant 0 : i32
    return %c0_i32, %c0_i32_0 : i32, i32
  }
  func.func @transform_8(%arg0: i32) -> (i32, i32) {
    %c0_i32 = arith.constant 0 : i32
    %c0_i32_0 = arith.constant 0 : i32
    return %arg0, %c0_i32 : i32, i32
  }
  func.func @transform_9(%arg0: i32) -> (i32, i32) {
    %c0_i32 = arith.constant 0 : i32
    %c0_i32_0 = arith.constant 0 : i32
    return %arg0, %c0_i32 : i32, i32
  }
  func.func @transform_10(%arg0: i32) -> (i32, i32) {
    %c0_i32 = arith.constant 0 : i32
    %c0_i32_0 = arith.constant 0 : i32
    return %arg0, %c0_i32 : i32, i32
  }
}

</mosaic_0001>

<bundles_post_ra>
// kernel: tpu_custom_call.1
= control target key start
LH: loop header
LB: loop body
LE: loop exit
PB: predicated region body
PF: predicated region fallthrough
CT: control target
= control target key end

     0   :  { %17 = vsyncpa [#allocation4], 0  ;;  %s818_s0 = inlined_call_operand.<no memory space> [shape: f32[1,1], index: 0, kind: input, shape index: {}]   ;;  %s819_s1 = inlined_call_operand.vmem [shape: f32[8,128], index: 1, kind: input, shape index: {}]   ;;  %s820_s2 = inlined_call_operand.hbm [shape: f32[8,128], index: 2, kind: input, shape index: {}, may-alias: {2,8}]   ;;  %s821_s3 = inlined_call_operand.hbm [shape: f32[8,128], index: 3, kind: input, shape index: {}, may-alias: {3,9}]   ;;  %s822_s4 = inlined_call_operand.hbm [shape: bf16[128,128], index: 4, kind: input, shape index: {}]   ;;  %s823_s5 = inlined_call_operand.vmem [shape: f32[1,128], index: 5, kind: input, shape index: {}]   ;;  %s824_s6 = inlined_call_operand.hbm [shape: bf16[128,128], index: 6, kind: input, shape index: {}]   ;;  %s825_s7 = inlined_call_operand.vmem [shape: f32[1,128], index: 7, kind: input, shape index: {}]   ;;  %s826_s8 = inlined_call_operand.hbm [shape: f32[8,128], index: 8, kind: output, shape index: {0}, may-alias: {2,8}]   ;;  %s827_s9 = inlined_call_operand.hbm [shape: f32[8,128], index: 9, kind: output, shape index: {1}, may-alias: {3,9}]   ;;  %s828_s10 = inlined_call_operand.hbm [shape: f32[8,128], index: 10, kind: output, shape index: {2}]  }
   0x1   :  { %18 = vsyncpa [#allocation7], 0 }
   0x2   :  { %19 = vsyncpa [#allocation10], 0 }
   0x3   :  { %20 = vsyncpa [#allocation5], 0 }
   0x4   :  { %21 = vsyncpa [#allocation13], 0  ;;  %s642_s13 = smov [#allocation6]   ;;  %s643_s15 = smov [#allocation3]  }
   0x5   :  { %s42_s14 = sshll.u32 %s642_s13, 4  ;;  %s32_s16 = sshll.u32 %s643_s15, 4  ;;  %s43_s14 = int_to_ptr.vmem [resolvable:$true] %s42_s14  ;;  %s33_s16 = int_to_ptr.vmem [resolvable:$true] %s32_s16 }
   0x6   :  { %s478_s19 = scalar_lea.hbm %s821_s3, 128 }
   0x7   :  { %p479_p0 = scmp.ne.s32.totalorder %s821_s3, %s478_s19  ;;  %p482_p1 = scmp.lt.u32.totalorder %s478_s19, %s821_s3 }
   0x9   :  { %p484_p2 = pnand %p482_p1, %p479_p0 }
   0xb   :  { %487 = shalt.err (!%p484_p2)
}
   0xc   :  { %s488_s24 = scalar_lea.vmem %s43_s14, 128  ;;  %p493_p4 = scmp.lt.s32.totalorder %s43_s14, %s43_s14 }
   0xd   :  { %p489_p3 = scmp.ne.s32.totalorder %s43_s14, %s488_s24  ;;  %p494_p5 = scmp.lt.s32.totalorder %s488_s24, %s488_s24 }
   0xf   :  { %p495_p6 = por %p494_p5, %p493_p4 }
  0x11   :  { %p496_p7 = pnand %p495_p6, %p489_p3 }
  0x13   :  { %499 = shalt.err (!%p496_p7)
}
  0x14   :  { %45 = dma.hbm_to_vmem [thread:$0]  %s821_s3, 128, %s43_s14, [#allocation7]  }
  0x15   :  { %s500_s29 = scalar_lea.hbm %s820_s2, 128 }
  0x16   :  { %p501_p8 = scmp.ne.s32.totalorder %s820_s2, %s500_s29  ;;  %p504_p9 = scmp.lt.u32.totalorder %s500_s29, %s820_s2 }
  0x18   :  { %p506_p10 = pnand %p504_p9, %p501_p8 }
  0x1a   :  { %509 = shalt.err (!%p506_p10)
}
  0x1b   :  { %s510_s15 = scalar_lea.vmem %s33_s16, 128  ;;  %p515_p12 = scmp.lt.s32.totalorder %s33_s16, %s33_s16 }
  0x1c   :  { %p511_p11 = scmp.ne.s32.totalorder %s33_s16, %s510_s15  ;;  %p516_p13 = scmp.lt.s32.totalorder %s510_s15, %s510_s15 }
  0x1e   :  { %p517_p0 = por %p516_p13, %p515_p12 }
  0x20   :  { %p518_p1 = pnand %p517_p0, %p511_p11 }
  0x22   :  { %521 = shalt.err (!%p518_p1)
}
  0x23   :  { %35 = dma.hbm_to_vmem [thread:$0]  %s820_s2, 128, %s33_s16, [#allocation4]  }
  0x24   :  { %s644_s17 = smov [#allocation8]   ;;  %s522_s21 = scalar_lea.hbm %s822_s4, 1024 }
  0x25   :  { %s51_s18 = sshll.u32 %s644_s17, 4  ;;  %p523_p2 = scmp.ne.s32.totalorder %s822_s4, %s522_s21  ;;  %s52_s18 = int_to_ptr.vmem [resolvable:$true] %s51_s18 }
  0x26   :  { %p526_p3 = scmp.lt.u32.totalorder %s522_s21, %s822_s4 }
  0x28   :  { %p528_p4 = pnand %p526_p3, %p523_p2 }
  0x2a   :  { %531 = shalt.err (!%p528_p4)
}
  0x2b   :  { %s532_s26 = scalar_lea.vmem %s52_s18, 1024  ;;  %p537_p6 = scmp.lt.s32.totalorder %s52_s18, %s52_s18 }
  0x2c   :  { %p533_p5 = scmp.ne.s32.totalorder %s52_s18, %s532_s26  ;;  %p538_p7 = scmp.lt.s32.totalorder %s532_s26, %s532_s26 }
  0x2e   :  { %p539_p8 = por %p538_p7, %p537_p6 }
  0x30   :  { %p540_p9 = pnand %p539_p8, %p533_p5 }
  0x32   :  { %543 = shalt.err (!%p540_p9)
}
  0x33   :  { %s645_s2 = smov 64   ;;  %s646_s16 = smov 4  }
  0x34   :  { %57 = dma.hbm_to_vmem [thread:$0]  %s822_s4, 1024, %s52_s18, [#allocation7], %s645_s2, %s645_s2, %s646_s16  }
  0x35   :  { %s647_s29 = smov [#allocation9]   ;;  %s544_s13 = scalar_lea.hbm %s824_s6, 1024 }
  0x36   :  { %s65_s30 = sshll.u32 %s647_s29, 4  ;;  %p545_p10 = scmp.ne.s32.totalorder %s824_s6, %s544_s13  ;;  %s66_s30 = int_to_ptr.vmem [resolvable:$true] %s65_s30 }
  0x37   :  { %p548_p11 = scmp.lt.u32.totalorder %s544_s13, %s824_s6 }
  0x39   :  { %p550_p12 = pnand %p548_p11, %p545_p10 }
  0x3b   :  { %553 = shalt.err (!%p550_p12)
}
  0x3c   :  { %s554_s19 = scalar_lea.vmem %s66_s30, 1024  ;;  %p559_p0 = scmp.lt.s32.totalorder %s66_s30, %s66_s30 }
  0x3d   :  { %p555_p13 = scmp.ne.s32.totalorder %s66_s30, %s554_s19  ;;  %p560_p1 = scmp.lt.s32.totalorder %s554_s19, %s554_s19 }
  0x3f   :  { %p561_p2 = por %p560_p1, %p559_p0 }
  0x41   :  { %p562_p3 = pnand %p561_p2, %p555_p13 }
  0x43   :  { %565 = shalt.err (!%p562_p3)
}
  0x44   :  { %71 = dma.hbm_to_vmem [thread:$0]  %s824_s6, 1024, %s66_s30, [#allocation10], %s645_s2, %s645_s2, %s646_s16  }
  0x45   :  { %632 = dma.done.wait [#allocation4], 128  }
  0x46   :  { %633 = vsyncadd [#allocation4], 4294967168 }
  0x47   :  { %634 = dma.done.wait [#allocation7], 1152  }
  0x48   :  { %635 = vsyncadd [#allocation7], 4294966144 }
  0x49   :  { %636 = dma.done.wait [#allocation10], 1024  }
  0x4a   :  { %637 = vsyncadd [#allocation10], 4294966272  ;;  %v648_v0 = vmov 0.0   ;;  %vm649_vm0 = vmmov 0   ;;  %v458_v1 = vld [vmem:[#allocation8] sm:$0xff]   ;;  %v460_v3 = vld [vmem:[#allocation8 + $0x8] sm:$0xff]   ;;  %v319_v35 = vstv %s818_s0 }
  0x4b   :  { %407 = vmatprep.subr.bf16.mxu0 %v648_v0  ;;  %427 = vmatprep.subr.bf16.mxu1 %v648_v0  ;;  %v459_v2 = vld [vmem:[#allocation9] sm:$0xff]   ;;  %v461_v4 = vld [vmem:[#allocation9 + $0x8] sm:$0xff]   ;;  %v462_v5 = vld [vmem:[#allocation8 + $0x10] sm:$0xff]   ;;  %s651_s26 = smov [#allocation14]   ;;  %s652_s16 = smov [#allocation11]  }
  0x4c   :  { %423 = vmatprep.mubr.msk.bf16.mxu0 %vm649_vm0, %v648_v0  ;;  %443 = vmatprep.mubr.msk.bf16.mxu1 %vm649_vm0, %v648_v0  ;;  %v463_v6 = vld [vmem:[#allocation9 + $0x10] sm:$0xff]   ;;  %v464_v7 = vld [vmem:[#allocation8 + $0x18] sm:$0xff]   ;;  %v466_v9 = vld [vmem:[#allocation8 + $0x20] sm:$0xff]   ;;  %s353_s2 = sshll.u32 %s651_s26, 4  ;;  %s333_s27 = sshll.u32 %s652_s16, 4  ;;  %s768_s2 = int_to_ptr.vmem [resolvable:$true] %s353_s2  ;;  %s770_s27 = int_to_ptr.vmem [resolvable:$true] %s333_s27 }
  0x4d   :  { %408 = vmatpush3.bf16.msra.mxu0 %v458_v1  ;;  %428 = vmatpush3.bf16.msra.mxu1 %v459_v2  ;;  %v465_v8 = vld [vmem:[#allocation9 + $0x18] sm:$0xff]   ;;  %v467_v10 = vld [vmem:[#allocation9 + $0x20] sm:$0xff]   ;;  %v468_v11 = vld [vmem:[#allocation8 + $0x28] sm:$0xff]  }
  0x4e   :  { %409 = vmatprep.subr.bf16.mxu0 %v648_v0  ;;  %429 = vmatprep.subr.bf16.mxu1 %v648_v0  ;;  %v469_v12 = vld [vmem:[#allocation9 + $0x28] sm:$0xff]   ;;  %v470_v13 = vld [vmem:[#allocation8 + $0x30] sm:$0xff]   ;;  %v472_v17 = vld [vmem:[#allocation8 + $0x38] sm:$0xff]  }
  0x4f   :  { %v88_v14 = vld [vmem:[%s819_s1] sm:$0xff]  ;;  %v473_v18 = vld [vmem:[#allocation9 + $0x38] sm:$0xff]  }
  0x50   :  { %v471_v15 = vld [vmem:[#allocation9 + $0x30] sm:$0xff]   ;;  %v92_v16 = vmul.f32 %v88_v14, %v88_v14  ;;  %v91_v20 = vpack.c.bf16 %v88_v14, %v88_v14  ;;  %v90_v37 = vld [vmem:[#allocation6] sm:$0xff] }
  0x51   :  { %410 = vmatpush3.bf16.msra.mxu0 %v460_v3  ;;  %430 = vmatpush3.bf16.msra.mxu1 %v461_v4  ;;  %v371_v21 = vld [vmem:[%s823_s5] ss:$0 sm:$0xff] }
  0x52   :  { %411 = vmatprep.subr.bf16.mxu0 %v648_v0  ;;  %431 = vmatprep.subr.bf16.mxu1 %v648_v0  ;;  %v93_v19 = vpack.c.bf16 %v92_v16, %v92_v16  ;;  %v380_v22 = vld [vmem:[%s825_s7] ss:$0 sm:$0xff]  ;;  %s650_s7 = smov [#allocation12]  }
  0x53   :  { %s343_s25 = sshll.u32 %s650_s7, 4  ;;  %v89_v40 = vld [vmem:[#allocation3] sm:$0xff]  ;;  %s344_s25 = int_to_ptr.vmem [resolvable:$true] %s343_s25 }
  0x54   :  { %s566_s28 = scalar_lea.vmem %s344_s25, 128  ;;  %p571_p5 = scmp.lt.s32.totalorder %s344_s25, %s344_s25 }
  0x55   :  { %412 = vmatpush3.bf16.msra.mxu0 %v462_v5  ;;  %432 = vmatpush3.bf16.msra.mxu1 %v463_v6  ;;  %p567_p4 = scmp.ne.s32.totalorder %s344_s25, %s566_s28  ;;  %p572_p6 = scmp.lt.s32.totalorder %s566_s28, %s566_s28 }
  0x56   :  { %413 = vmatprep.subr.bf16.mxu0 %v648_v0  ;;  %433 = vmatprep.subr.bf16.mxu1 %v648_v0 }
  0x57   :  { %p573_p7 = por %p572_p6, %p571_p5 }
  0x59   :  { %414 = vmatpush3.bf16.msra.mxu0 %v464_v7  ;;  %434 = vmatpush3.bf16.msra.mxu1 %v465_v8  ;;  %p574_p8 = pnand %p573_p7, %p567_p4 }
  0x5a   :  { %415 = vmatprep.subr.bf16.mxu0 %v648_v0  ;;  %435 = vmatprep.subr.bf16.mxu1 %v648_v0 }
  0x5d   :  { %416 = vmatpush3.bf16.msra.mxu0 %v466_v9  ;;  %436 = vmatpush3.bf16.msra.mxu1 %v467_v10 }
  0x5e   :  { %417 = vmatprep.subr.bf16.mxu0 %v648_v0  ;;  %437 = vmatprep.subr.bf16.mxu1 %v648_v0 }
  0x61   :  { %418 = vmatpush3.bf16.msra.mxu0 %v468_v11  ;;  %438 = vmatpush3.bf16.msra.mxu1 %v469_v12 }
  0x62   :  { %419 = vmatprep.subr.bf16.mxu0 %v648_v0  ;;  %439 = vmatprep.subr.bf16.mxu1 %v648_v0 }
  0x65   :  { %420 = vmatpush3.bf16.msra.mxu0 %v470_v13  ;;  %440 = vmatpush3.bf16.msra.mxu1 %v471_v15 }
  0x66   :  { %421 = vmatprep.subr.bf16.mxu0 %v648_v0  ;;  %441 = vmatprep.subr.bf16.mxu1 %v648_v0 }
  0x69   :  { %422 = vmatpush3.bf16.msra.mxu0 %v472_v17  ;;  %442 = vmatpush3.bf16.msra.mxu1 %v473_v18 }
  0x6c   :  { %424 = vmatmul.mubr.bf16.vlgmr.msra.gmra.mrb[0].mxu0 %v93_v19  ;;  %444 = vmatmul.mubr.bf16.vlgmr.msra.gmra.mrb[0].mxu1 %v91_v20 }
 0x13f   :  { %v199_v23 = vpop.f32.mrb[0].mxu0  ;;  %v310_v25 = vpop.f32.mrb[0].mxu1 }
 0x140   :  { %v200_v24 = vadd.f32 %v371_v21, %v199_v23  ;;  %v425_v26 = vpop.f32.mrb[1].mxu0  ;;  %v311_v27 = vadd.f32 %v380_v22, %v310_v25  ;;  %v445_v28 = vpop.f32.mrb[1].mxu1 }
 0x141   :  { %v202_v29 = vpop.f32.mrb[2].mxu0  ;;  %v313_v30 = vpop.f32.mrb[2].mxu1 }
 0x142   :  { %474 = vtanh.f32 %v200_v24  ;;  %v426_v31 = vpop.f32.mrb[3].mxu0  ;;  %v446_v32 = vpop.f32.mrb[3].mxu1 }
 0x143   :  { %476 = vtanh.f32 %v311_v27 }
 0x14c   :  { %v475_v33 = vpop.eup %474 }
 0x14d   :  { %v477_v34 = vpop.eup %476  ;;  %326 = vst [vmem:[#allocation14] sm:$0xff] %v475_v33 }
 0x14e   :  { %v318_v36 = vadd.f32 %v477_v34, %v475_v33 }
 0x150   :  { %v320_v38 = vmul.f32 %v319_v35, %v318_v36 }
 0x152   :  { %v321_v39 = vadd.f32 %v320_v38, %v90_v37 }
 0x154   :  { %325 = vst [vmem:[#allocation12] sm:$0xff] %v321_v39  ;;  %v322_v41 = vmul.f32 %v321_v39, %v319_v35 }
 0x155   :  { %577 = shalt.err (!%p574_p8)
}
 0x156   :  { %s578_s30 = scalar_lea.hbm %s827_s9, 128 }
 0x157   :  { %p579_p9 = scmp.ne.s32.totalorder %s827_s9, %s578_s30  ;;  %p582_p10 = scmp.lt.u32.totalorder %s578_s30, %s827_s9 }
 0x159   :  { %p584_p11 = pnand %p582_p10, %p579_p9 }
 0x15b   :  { %587 = shalt.err (!%p584_p11)
}
 0x15c   :  { %346 = dma.vmem_to_hbm [thread:$0]  %s344_s25, 128, %s827_s9, [#allocation13]   ;;  %v323_v42 = vadd.f32 %v322_v41, %v89_v40 }
 0x15d   :  { %s588_s17 = scalar_lea.vmem %s768_s2, 128  ;;  %p593_p13 = scmp.lt.s32.totalorder %s768_s2, %s768_s2 }
 0x15e   :  { %p589_p12 = scmp.ne.s32.totalorder %s768_s2, %s588_s17  ;;  %p594_p0 = scmp.lt.s32.totalorder %s588_s17, %s588_s17 }
 0x160   :  { %p595_p1 = por %p594_p0, %p593_p13 }
 0x162   :  { %p596_p2 = pnand %p595_p1, %p589_p12 }
 0x164   :  { %599 = shalt.err (!%p596_p2)
}
 0x165   :  { %s600_s18 = scalar_lea.hbm %s828_s10, 128 }
 0x166   :  { %p601_p3 = scmp.ne.s32.totalorder %s828_s10, %s600_s18  ;;  %p604_p4 = scmp.lt.u32.totalorder %s600_s18, %s828_s10 }
 0x168   :  { %p606_p5 = pnand %p604_p4, %p601_p3 }
 0x16a   :  { %609 = shalt.err (!%p606_p5)
}
 0x16b   :  { %356 = dma.vmem_to_hbm [thread:$0]  %s768_s2, 128, %s828_s10, [#allocation13]   ;;  %324 = vst [vmem:[#allocation11] sm:$0xff] %v323_v42 }
 0x16c   :  { %s610_s23 = scalar_lea.vmem %s770_s27, 128  ;;  %p615_p7 = scmp.lt.s32.totalorder %s770_s27, %s770_s27 }
 0x16d   :  { %p611_p6 = scmp.ne.s32.totalorder %s770_s27, %s610_s23  ;;  %p616_p8 = scmp.lt.s32.totalorder %s610_s23, %s610_s23 }
 0x16f   :  { %p617_p9 = por %p616_p8, %p615_p7 }
 0x171   :  { %p618_p10 = pnand %p617_p9, %p611_p6 }
 0x173   :  { %621 = shalt.err (!%p618_p10)
}
 0x174   :  { %s622_s7 = scalar_lea.hbm %s826_s8, 128 }
 0x175   :  { %p623_p11 = scmp.ne.s32.totalorder %s826_s8, %s622_s7  ;;  %p626_p12 = scmp.lt.u32.totalorder %s622_s7, %s826_s8 }
 0x177   :  { %p628_p13 = pnand %p626_p12, %p623_p11 }
 0x179   :  { %631 = shalt.err (!%p628_p13)
}
 0x17a   :  { %336 = dma.vmem_to_hbm [thread:$0]  %s770_s27, 128, %s826_s8, [#allocation5]  }
 0x17b   :  { %638 = dma.done.wait [#allocation5], 128  }
 0x17c   :  { %639 = vsyncadd [#allocation5], 4294967168 }
 0x17d   :  { %640 = dma.done.wait [#allocation13], 256  }
 0x17e   :  { %641 = vsyncadd [#allocation13], 4294967040 }
 0x17f   :  { %366 = vsyncpa [#allocation4], 1 }
 0x180   :  { %367 = vsyncpa [#allocation7], 1 }
 0x181   :  { %368 = vsyncpa [#allocation10], 1 }
 0x182   :  { %369 = vsyncpa [#allocation5], 1 }
 0x183   :  { %370 = vsyncpa [#allocation13], 1 }

</bundles_post_ra>
